<compile_context>
chip_gen: v5e
topology: v5e:2x2
jax: 0.10.0
libtpu: 0.0.40
codegen_flags: <defaults>
</compile_context>

<pallas_src>
import functools

import jax
import jax.numpy as jnp
from jax.experimental import pallas as pl
from jax.experimental.pallas import tpu as pltpu


def _avg_cost_kernel(x_ref, y_ref, d_ref, *out_refs,
                     tile_hw, hw_total, n_tiles, ignore_index):
    has_ignore = ignore_index is not None
    cost_ref = out_refs[0]
    cnt_ref = out_refs[1] if has_ignore else None

    t = pl.program_id(1)

    # Per-batch resident accumulators live in the output blocks themselves.
    @pl.when(t == 0)
    def _():
        cost_ref[...] = jnp.zeros_like(cost_ref)
        if has_ignore:
            cnt_ref[...] = jnp.zeros_like(cnt_ref)

    x = x_ref[0]                                            # (C, tile_hw), native dtype
    c = x.shape[0]

    # Hard one-hot of argmax over the class (sublane) axis, native dtype compares.
    cls = jax.lax.broadcasted_iota(jnp.int32, x.shape, 0)   # (C, tile_hw)
    xmax = jnp.max(x, axis=0, keepdims=True)                # (1, tile_hw)
    first_idx = jnp.min(jnp.where(x >= xmax, cls, c),
                        axis=0, keepdims=True)              # (1, tile_hw), first max
    onehot_pred = jnp.where(cls == first_idx, 1.0, 0.0)     # (C, tile_hw) f32

    # temp[a, j] = sum_b D[a, b] * onehot_pred[b, j] = D[a, pred_j]   (MXU)
    temp = jnp.dot(d_ref[...].astype(jnp.float32), onehot_pred,
                   preferred_element_type=jnp.float32)      # (C, tile_hw)

    y = y_ref[0]                                            # (1, tile_hw) int32
    # cost_j = D[y_j, pred_j] : fused masked class-axis sum (no onehot_true tile).
    cost_row = jnp.sum(jnp.where(cls == y, temp, 0.0),
                       axis=0, keepdims=True)               # (1, tile_hw)

    def accumulate(tail_mask):
        if has_ignore:
            valid = (y != ignore_index)
            if tail_mask is not None:
                valid = jnp.logical_and(valid, tail_mask)
            # NaN-safe select (tail-block data may be stale): select, don't multiply.
            cost_ref[...] += jnp.where(valid, cost_row, 0.0)[None]
            cnt_ref[...] += jnp.where(valid, 1.0, 0.0)[None]
        else:
            if tail_mask is not None:
                cost_ref[...] += jnp.where(tail_mask, cost_row, 0.0)[None]
            else:
                cost_ref[...] += cost_row[None]

    has_tail = (hw_total % tile_hw) != 0
    if has_tail:
        # Common path: plain accumulate; lane-iota mask only on the last tile.
        @pl.when(t < n_tiles - 1)
        def _():
            accumulate(None)

        @pl.when(t == n_tiles - 1)
        def _():
            lane = jax.lax.broadcasted_iota(jnp.int32, (1, tile_hw), 1)
            in_bounds = (t * tile_hw + lane) < hw_total
            accumulate(in_bounds)
    else:
        accumulate(None)


def _choose_tile_hw(hw, c, itemsize=4, target_bytes=2 * 1024 * 1024, max_lanes=32768):
    """Lane-dense spatial tile sized by a byte target (~2 MiB of logits per
    block): big enough to amortize the ~0.35 us per-grid-step overhead, small
    enough that double-buffered blocks fit comfortably in VMEM on v5e/v6e/v7x."""
    cap = (target_bytes // (c * itemsize)) // 128 * 128
    cap = max(128, min(cap, max_lanes))
    if hw <= cap:
        return hw          # full-extent block allowed even if not %128
    return cap             # multiple of 128; ragged tail masked in-kernel


def average_cost(logits_nchw, y_true, D, ignore_index=None, tile_hw=None):
    """Pallas implementation of AverageCost.forward for 4D NCHW logits."""
    b, c, h, w = logits_nchw.shape
    hw = h * w
    itemsize = jnp.dtype(logits_nchw.dtype).itemsize

    # Pure views: no HBM copies (no transpose, no pad).
    x = logits_nchw.reshape(b, c, hw)
    y = y_true.reshape(b, 1, hw).astype(jnp.int32)

    if tile_hw is None:
        tile_hw = _choose_tile_hw(hw, c, itemsize)
    n_tiles = pl.cdiv(hw, tile_hw)

    has_ignore = ignore_index is not None

    out_shape = [jax.ShapeDtypeStruct((b, 1, tile_hw), jnp.float32)]
    out_specs = [pl.BlockSpec((1, 1, tile_hw), lambda bi, ti: (bi, 0, 0))]
    if has_ignore:
        out_shape.append(jax.ShapeDtypeStruct((b, 1, tile_hw), jnp.float32))
        out_specs.append(pl.BlockSpec((1, 1, tile_hw), lambda bi, ti: (bi, 0, 0)))

    kernel = functools.partial(
        _avg_cost_kernel, tile_hw=tile_hw, hw_total=hw,
        n_tiles=n_tiles, ignore_index=ignore_index)

    # VMEM estimate: double-buffered logits + labels, D, resident per-batch outputs.
    n_out = 2 if has_ignore else 1
    est = (2 * (c * tile_hw * itemsize + tile_hw * 4)
           + 2 * c * c * 4
           + n_out * 2 * tile_hw * 4)
    vmem_limit = min(48 * 1024 * 1024,
                     max(16 * 1024 * 1024, 2 * est + (4 << 20)))

    outs = pl.pallas_call(
        kernel,
        out_shape=tuple(out_shape),
        grid_spec=pltpu.PrefetchScalarGridSpec(
            num_scalar_prefetch=0,
            grid=(b, n_tiles),
            in_specs=[
                pl.BlockSpec((1, c, tile_hw), lambda bi, ti: (bi, 0, ti)),  # logits, NCHW view
                pl.BlockSpec((1, 1, tile_hw), lambda bi, ti: (bi, 0, ti)),  # labels, lane-dense
                pl.BlockSpec((c, c), lambda bi, ti: (0, 0)),                # cost matrix D
            ],
            out_specs=tuple(out_specs),
        ),
        compiler_params=pltpu.CompilerParams(
            dimension_semantics=("parallel", "arbitrary"),   # batch axis megacore-shardable
            vmem_limit_bytes=int(vmem_limit)),
    )(x, y, D)

    cost_part = outs[0]
    if has_ignore:
        # Note: if ignore_index filters out every element this returns NaN,
        # matching the reference semantics.
        return jnp.sum(cost_part) / jnp.sum(outs[1])
    return jnp.sum(cost_part) / jnp.float32(b * h * w)


def _reference_jax(logits_nchw, y_true, D, ignore_index=None):
    b, c, h, w = logits_nchw.shape
    x = jnp.transpose(logits_nchw, (0, 2, 3, 1)).reshape(b * h * w, c)
    y = y_true.reshape(b * h * w).astype(jnp.int32)
    pred = jnp.argmax(jax.nn.softmax(x, axis=-1), axis=-1)
    cost = D[y, pred]
    if ignore_index is None:
        return jnp.mean(cost)
    mask = (y != ignore_index)
    return jnp.sum(cost * mask) / jnp.sum(mask)


if __name__ == "__main__":
    key = jax.random.PRNGKey(0)
    B, C, H, W = 2, 8, 16, 16

    k_x, k_y = jax.random.split(key)
    logits = jax.random.normal(k_x, (B, C, H, W), dtype=jnp.float32)
    y_true = jax.random.randint(k_y, (B, H, W), 0, C, dtype=jnp.int32)

    # Deterministic cost matrix: D[i, j] = |i - j| (ordinal misclassification cost).
    idx = jnp.arange(C, dtype=jnp.float32)
    D = jnp.abs(idx[:, None] - idx[None, :])

    # No ignore_index.
    out = jax.block_until_ready(average_cost(logits, y_true, D, ignore_index=None))
    ref = jax.block_until_ready(_reference_jax(logits, y_true, D, ignore_index=None))
    assert jnp.allclose(out, ref, rtol=1e-5, atol=1e-5), (float(out), float(ref))

    # With ignore_index.
    out_ig = jax.block_until_ready(average_cost(logits, y_true, D, ignore_index=0))
    ref_ig = jax.block_until_ready(_reference_jax(logits, y_true, D, ignore_index=0))
    assert jnp.allclose(out_ig, ref_ig, rtol=1e-5, atol=1e-5), (float(out_ig), float(ref_ig))

    # Ragged spatial tail + forced small tile to exercise the masked last-block path.
    H2, W2 = 18, 18
    k_x2, k_y2 = jax.random.split(k_y)
    logits2 = jax.random.normal(k_x2, (B, C, H2, W2), dtype=jnp.float32)
    y2 = jax.random.randint(k_y2, (B, H2, W2), 0, C, dtype=jnp.int32)

    out2 = jax.block_until_ready(average_cost(logits2, y2, D, ignore_index=None, tile_hw=128))
    ref2 = jax.block_until_ready(_reference_jax(logits2, y2, D, ignore_index=None))
    assert jnp.allclose(out2, ref2, rtol=1e-5, atol=1e-5), (float(out2), float(ref2))

    out3 = jax.block_until_ready(average_cost(logits2, y2, D, ignore_index=1, tile_hw=128))
    ref3 = jax.block_until_ready(_reference_jax(logits2, y2, D, ignore_index=1))
    assert jnp.allclose(out3, ref3, rtol=1e-5, atol=1e-5), (float(out3), float(ref3))

    print("KERNEL_OK")
</pallas_src>

<mosaic_0001>
module attributes {stable_mosaic.version = 11 : i64} {
  func.func @_avg_cost_kernel(%arg0: i32, %arg1: i32, %arg2: memref<1x8x256xf32, #tpu.memory_space<vmem>>, %arg3: memref<1x1x256xi32, #tpu.memory_space<vmem>>, %arg4: memref<8x8xf32, #tpu.memory_space<vmem>>, %arg5: memref<1x1x256xf32, #tpu.memory_space<vmem>>) attributes {dimension_semantics = [#tpu.dimension_semantics<parallel>, #tpu.dimension_semantics<arbitrary>], iteration_bounds = array<i64: 2, 1>, scalar_prefetch = 0 : i64, scratch_operands = 0 : i64, tpu.core_type = #tpu.core_type<tc>, window_params = [{transform_indices = @transform_0, window_bounds = array<i64: 1, 8, 256>}, {transform_indices = @transform_1, window_bounds = array<i64: 1, 1, 256>}, {pipeline_mode = #tpu.pipeline_mode<synchronous>, transform_indices = @transform_2, window_bounds = array<i64: 8, 8>}, {transform_indices = @transform_3, window_bounds = array<i64: 1, 1, 256>}]} {
    %c0_i32 = arith.constant 0 : i32
    %0 = arith.cmpi eq, %arg1, %c0_i32 : i32
    %1 = arith.extui %0 : i1 to i32
    %c0_i32_0 = arith.constant 0 : i32
    %2 = arith.cmpi ne, %1, %c0_i32_0 : i32
    scf.if %2 {
      %cst_20 = arith.constant 0.000000e+00 : f32
      %33 = vector.broadcast %cst_20 : f32 to vector<1x1x256xf32>
      %c0_21 = arith.constant 0 : index
      %c0_22 = arith.constant 0 : index
      %c0_23 = arith.constant 0 : index
      %34 = vector.load %arg5[%c0_21, %c0_22, %c0_23] : memref<1x1x256xf32, #tpu.memory_space<vmem>>, vector<1x1x256xf32>
      tpu.vector_store %arg5[%c0_21, %c0_22, %c0_23], %33 {strides = array<i32>} : memref<1x1x256xf32, #tpu.memory_space<vmem>>, vector<1x1x256xf32>,
    } else {
    }
    %c0 = arith.constant 0 : index
    %c0_1 = arith.constant 0 : index
    %c0_2 = arith.constant 0 : index
    %3 = vector.load %arg2[%c0, %c0_1, %c0_2] : memref<1x8x256xf32, #tpu.memory_space<vmem>>, vector<1x8x256xf32>
    %4 = vector.shape_cast %3 : vector<1x8x256xf32> to vector<8x256xf32>
    %5 = tpu.iota {dimensions = array<i32: 0>} : vector<8x256xi32>
    %cst = arith.constant dense<0xFF800000> : vector<256xf32>
    %6 = vector.multi_reduction <maximumf>, %4, %cst [0] : vector<8x256xf32> to vector<256xf32>
    %7 = vector.shape_cast %6 : vector<256xf32> to vector<1x256xf32>
    %8 = vector.broadcast %7 : vector<1x256xf32> to vector<8x256xf32>
    %9 = arith.cmpf oge, %4, %8 : vector<8x256xf32>
    %c8_i32 = arith.constant 8 : i32
    %10 = vector.broadcast %c8_i32 : i32 to vector<8x256xi32>
    %11 = arith.select %9, %5, %10 : vector<8x256xi1>, vector<8x256xi32>
    %cst_3 = arith.constant dense<2147483647> : vector<256xi32>
    %12 = vector.multi_reduction <minsi>, %11, %cst_3 [0] : vector<8x256xi32> to vector<256xi32>
    %13 = vector.shape_cast %12 : vector<256xi32> to vector<1x256xi32>
    %14 = vector.broadcast %13 : vector<1x256xi32> to vector<8x256xi32>
    %15 = arith.cmpi eq, %5, %14 : vector<8x256xi32>
    %cst_4 = arith.constant 1.000000e+00 : f32
    %cst_5 = arith.constant 0.000000e+00 : f32
    %16 = vector.broadcast %cst_4 : f32 to vector<8x256xf32>
    %17 = vector.broadcast %cst_5 : f32 to vector<8x256xf32>
    %18 = arith.select %15, %16, %17 : vector<8x256xi1>, vector<8x256xf32>
    %c0_6 = arith.constant 0 : index
    %c0_7 = arith.constant 0 : index
    %19 = vector.load %arg4[%c0_6, %c0_7] : memref<8x8xf32, #tpu.memory_space<vmem>>, vector<8x8xf32>
    %cst_8 = arith.constant dense<0.000000e+00> : vector<8x256xf32>
    %20 = tpu.matmul %19, %18, %cst_8 {dimension_numbers = #tpu.dot_dimension_numbers<[1], [0], [0], [1], [0, 0, 1, 1], [], []>} : vector<8x8xf32>, vector<8x256xf32>, vector<8x256xf32> -> vector<8x256xf32>
    %c0_9 = arith.constant 0 : index
    %c0_10 = arith.constant 0 : index
    %c0_11 = arith.constant 0 : index
    %21 = vector.load %arg3[%c0_9, %c0_10, %c0_11] : memref<1x1x256xi32, #tpu.memory_space<vmem>>, vector<1x1x256xi32>
    %22 = vector.shape_cast %21 : vector<1x1x256xi32> to vector<1x256xi32>
    %23 = vector.broadcast %22 : vector<1x256xi32> to vector<8x256xi32>
    %24 = arith.cmpi eq, %5, %23 : vector<8x256xi32>
    %cst_12 = arith.constant 0.000000e+00 : f32
    %25 = vector.broadcast %cst_12 : f32 to vector<8x256xf32>
    %26 = arith.select %24, %20, %25 : vector<8x256xi1>, vector<8x256xf32>
    %cst_13 = arith.constant dense<0.000000e+00> : vector<256xf32>
    %27 = vector.multi_reduction <add>, %26, %cst_13 [0] : vector<8x256xf32> to vector<256xf32>
    %28 = vector.shape_cast %27 : vector<256xf32> to vector<1x256xf32>
    %c0_14 = arith.constant 0 : index
    %c0_15 = arith.constant 0 : index
    %c0_16 = arith.constant 0 : index
    %29 = vector.load %arg5[%c0_14, %c0_15, %c0_16] : memref<1x1x256xf32, #tpu.memory_space<vmem>>, vector<1x1x256xf32>
    %30 = vector.shape_cast %28 : vector<1x256xf32> to vector<1x1x256xf32>
    %31 = arith.addf %29, %30 : vector<1x1x256xf32>
    %c0_17 = arith.constant 0 : index
    %c0_18 = arith.constant 0 : index
    %c0_19 = arith.constant 0 : index
    %32 = vector.load %arg5[%c0_17, %c0_18, %c0_19] : memref<1x1x256xf32, #tpu.memory_space<vmem>>, vector<1x1x256xf32>
    tpu.vector_store %arg5[%c0_17, %c0_18, %c0_19], %31 {strides = array<i32>} : memref<1x1x256xf32, #tpu.memory_space<vmem>>, vector<1x1x256xf32>,
    return
  }
  func.func @transform_0(%arg0: i32, %arg1: i32) -> (i32, i32, i32) {
    %c0_i32 = arith.constant 0 : i32
    %c0_i32_0 = arith.constant 0 : i32
    return %arg0, %c0_i32, %arg1 : i32, i32, i32
  }
  func.func @transform_1(%arg0: i32, %arg1: i32) -> (i32, i32, i32) {
    %c0_i32 = arith.constant 0 : i32
    %c0_i32_0 = arith.constant 0 : i32
    return %arg0, %c0_i32, %arg1 : i32, i32, i32
  }
  func.func @transform_2(%arg0: i32, %arg1: i32) -> (i32, i32) {
    %c0_i32 = arith.constant 0 : i32
    %c0_i32_0 = arith.constant 0 : i32
    %c0_i32_1 = arith.constant 0 : i32
    return %c0_i32, %c0_i32_0 : i32, i32
  }
  func.func @transform_3(%arg0: i32, %arg1: i32) -> (i32, i32, i32) {
    %c0_i32 = arith.constant 0 : i32
    %c0_i32_0 = arith.constant 0 : i32
    %c0_i32_1 = arith.constant 0 : i32
    return %arg0, %c0_i32, %c0_i32_0 : i32, i32, i32
  }
}

</mosaic_0001>

<bundles_post_ra>
// kernel: tpu_custom_call.1
= control target key start
LH: loop header
LB: loop body
LE: loop exit
PB: predicated region body
PF: predicated region fallthrough
CT: control target
= control target key end

     0   :  { %s1009_s0 = inlined_call_operand.hbm [shape: f32[2,8,256], index: 0, kind: input, shape index: {}]   ;;  %s1010_s1 = inlined_call_operand.hbm [shape: s32[2,1,256], index: 1, kind: input, shape index: {}]   ;;  %s1011_s2 = inlined_call_operand.hbm [shape: f32[8,8], index: 2, kind: input, shape index: {}]   ;;  %s1012_s3 = inlined_call_operand.hbm [shape: f32[2,1,256], index: 3, kind: output, shape index: {}]  }
   0x1   :  { %1016 = sst [smem:[#allocation17_spill]] %s1011_s2 }
   0x2   :  { %8 = vsyncpa [#allocation3], 0 }
   0x3   :  { %10 = vsyncpa [#allocation3 + $0x1], 0 }
   0x4   :  { %11 = vsyncpa [#allocation6], 0 }
   0x5   :  { %13 = vsyncpa [#allocation6 + $0x1], 0 }
   0x6   :  { %14 = vsyncpa [#allocation4], 0 }
   0x7   :  { %16 = vsyncpa [#allocation4 + $0x1], 0  ;;  %s832_s12 = smov 0   ;;  %s834_s13 = smov 0  }
   0x8   :  { %s836_s14 = smov 0   ;;  %s838_s15 = smov 0  }
   0x9   :  { %s840_s16 = smov 0   ;;  %s842_s17 = smov 0  }
   0xa LB: > { %1017 = sst [smem:[#allocation13_spill]] %s795_s14  ;;  %s863_s18 = sadd.s32 4294967295, %s807_s17   ;;  %s807_s17 = sphi %s842_s17, %s22_s17   ;;  %s803_s16 = sphi %s840_s16, %s1036_s16   ;;  %s799_s15 = sphi %s838_s15, %s1035_s15   ;;  %s795_s14 = sphi %s836_s14, %s1031_s14   ;;  %s791_s13 = sphi %s834_s13, %s1034_s13   ;;  %s787_s12 = sphi %s832_s12, %s1033_s12  }
   0xb   : > { %s524_s19 = sadd.s32 4294967294, %s807_s17   ;;  %p56_p0 = scmp.ne.s32.totalorder %s791_s13, %s787_s12 }
   0xc   : > { %p57_p1 = scmp.eq.s32.totalorder %s863_s18, 0  ;;  %p129_p2 = scmp.eq.s32.totalorder %s863_s18, 1 }
   0xd   : > { %p135_p3 = scmp.eq.s32.totalorder %s524_s19, 1  ;;  %p525_p5 = scmp.ge.s32.totalorder %s807_s17, 1 }
   0xe   : > { %p872_p4 = por %p57_p1, %p56_p0  ;;  %p142_p7 = scmp.lt.s32.totalorder %s807_s17, 3 }
   0xf   : > { %p877_p6 = por %p135_p3, %p56_p0  ;;  %s1021_s2 = sld [smem:[#allocation17_spill]] }
  0x10   : > { %p885_p8 = pnand %p525_p5, %p142_p7  ;;  %p527_p9 = scmp.ge.s32.totalorder %s807_s17, 2 }
  0x11   : > { %s1019_s21 = scalar_select %p877_p6, 1, 0 }
  0x12   : > { %p557_p10 = pneg %p885_p8  ;;  %s809_s26 = smov [#allocation7]  }
  0x13   : > { %1020 = sst [smem:[#allocation14_spill]] %s1019_s21  ;;  %s156_s27 = sshll.u32 %s809_s26, 4  ;;  %s157_s27 = int_to_ptr.vmem [resolvable:$true] %s156_s27 }
  0x14   : > { %p558_p11 = pnand %p557_p10, %p57_p1  ;;  %s34_s28 = sadd.s32 1, %s803_s16 }
  0x15   : > { %s154_s24 = sshll.u32 %s1021_s2, 4  ;;  %p36_p12 = scmp.ge.s32.totalorder %s34_s28, 2  ;;  %s155_s24 = int_to_ptr.hbm [resolvable:$true] %s154_s24 }
  0x16   : > { %560 = dma.hbm_to_vmem [thread:$0]  (!%p558_p11), %s155_s24, 128, %s157_s27, [#allocation6]  }
  0x17   : > { %s43_s29 = sadd.s32 1, %s795_s14  ;;  %p50_p13 = scmp.ne.s32.totalorder %s795_s14, %s791_s13 }
  0x18   : > { %p51_p0 = scmp.eq.s32.totalorder %s807_s17, 0  ;;  %s1038_s28 = smov (%p36_p12, %s34_s28), 0 }
  0x19   : > { %1023 = sst [smem:[#allocation15_spill]] %s1038_s28  ;;  %p907_p5 = por %p129_p2, %p50_p13 }
  0x1a   : > { %p901_p3 = por %p51_p0, %p50_p13  ;;  %s38_s5 = ssub.s32 %s803_s16, %s1038_s28 }
  0x1b   : > { %p573_p7 = scmp.lt.s32.totalorder %s807_s17, 2  ;;  %p41_p10 = scmp.eq.s32.totalorder %s38_s5, 0 }
  0x1c   : > { %s167_s6 = sand.u32 1, %s795_s14   ;;  %s546_s9 = sshll.u32 %s803_s16, 4 }
  0x1d   : > { %s528_s7 = sshll.u32 %s167_s6, 4  ;;  %s178_s19 = scalar_lea.hbm %s1009_s0, %s546_s9 }
  0x1e   : > { %s916_s8 = scalar_select %p41_p10, %s795_s14, %s43_s29  }
  0x1f   : > { %s171_s22 = scalar_lea.vmem [#allocation2], %s528_s7  ;;  %s180_s24 = sshll.u32 %s178_s19, 4  ;;  %s181_s24 = int_to_ptr.hbm [resolvable:$true] %s180_s24 }
  0x20   : > { %1026 = sst [smem:[#allocation16_spill]] %s916_s8  ;;  %s182_s23 = sshll.u32 %s171_s22, 4  ;;  %s183_s23 = int_to_ptr.vmem [resolvable:$true] %s182_s23 }
  0x21   : > { %p562_p2 = pnand %p573_p7, %p901_p3  ;;  %s189_s26 = sand.u32 1, %s807_s17  }
  0x22   : > { %s531_s27 = sshll.u32 %s167_s6, 1  ;;  %s168_s5 = scalar_lea.sflag [#allocation3], %s167_s6 }
  0x23   : > { %564 = dma.hbm_to_vmem [thread:$0]  (!%p562_p2), %s181_s24, 256, %s183_s23, %s168_s5  }
  0x24   : > { %s532_s2 = sshll.u32 %s803_s16, 1  ;;  %s193_s14 = scalar_lea.vmem [#allocation5], %s531_s27 }
  0x25   : > { %s199_s8 = scalar_lea.hbm %s1010_s1, %s532_s2  ;;  %s203_s21 = sshll.u32 %s193_s14, 4  ;;  %s204_s21 = int_to_ptr.vmem [resolvable:$true] %s203_s21 }
  0x26   : > { %s201_s10 = sshll.u32 %s199_s8, 4  ;;  %s190_s7 = scalar_lea.sflag [#allocation6], %s189_s26  ;;  %s202_s10 = int_to_ptr.hbm [resolvable:$true] %s201_s10 }
  0x27   : > { %567 = dma.hbm_to_vmem [thread:$0]  (!%p562_p2), %s202_s10, 32, %s204_s21, %s190_s7  }
  0x28   : > { %212 = sbr.rel (%p885_p8) target bundleno = 227 (0xe3), region = 32  ;;  %s932_s30 = sand.u32 (!%p885_p8), 1, %s791_s13  }
  0x29   : > { %s534_s6 = sshll.u32 (!%p885_p8), %s932_s30, 4  ;;  %s215_s9 = scalar_lea.sflag (!%p885_p8), [#allocation3], %s932_s30 }
  0x2a   : > { %s218_s28 = scalar_lea.vmem (!%p885_p8), [#allocation2], %s534_s6 }
  0x2d   : > { %770 = dma.done.wait (%p872_p4), %s215_s9, 256  }
  0x2e   : > { %772 = vsyncadd (%p872_p4), %s215_s9, 4294967040  ;;  %s224_s2 = sand.u32 1, %s863_s18   ;;  %s535_s14 = sshll.u32 %s932_s30, 1 }
  0x2f   : > { %s225_s21 = scalar_lea.sflag [#allocation6], %s224_s2  ;;  %s944_s25 = scalar_lea.vmem [#allocation5], %s535_s14 }
  0x30   : > { %774 = dma.done.wait (%p872_p4), %s225_s21, 32  }
  0x31   : > { %776 = vsyncadd (%p872_p4), %s225_s21, 4294967264 }
  0x32   : > { %778 = dma.done.wait (%p57_p1), [#allocation6], 128  }
  0x33   : > { %780 = vsyncadd (%p57_p1), [#allocation6], 4294967168  ;;  %v273_v0 = vld [vmem:[%s218_s28] sm:$0xff]  ;;  %v274_v1 = vld [vmem:[%s218_s28 + $0x8] sm:$0xff]  ;;  %v268_v8 = vlaneseq  ;;  %vm316_vm8 = vcmask 64512   ;;  %v810_v31 = vmov 1.0  }
  0x34   : > { %v277_v2 = vrot.slane %v273_v0, 4  ;;  %v283_v3 = vrot.slane %v274_v1, 4  ;;  %v315_v30 = vld [vmem:[#allocation7] sm:$0xff]  ;;  %s960_s18 = scalar_lea.vmem [#allocation8], %s535_s14  ;;  %v811_v33 = vmov 0.0   ;;  %s543_s20 = sshll.u32 %s799_s15, 1 }
  0x35   : > { %v276_v13 = vshrl.u32 %v268_v8, 7  ;;  %vm954_vm11 = vcmp.lt.s32.totalorder %v268_v8, 256  ;;  %v360_v34 = vld [vmem:[%s944_s25] sm:$0x3]  ;;  %s403_s19 = scalar_lea.hbm %s1012_s3, %s543_s20  ;;  %vm383_vm14 = vcmask 1040384   ;;  %s405_s22 = sshll.u32 %s960_s18, 4  ;;  %s406_s22 = int_to_ptr.vmem [resolvable:$true] %s405_s22 }
  0x36   : > { %v278_v4 = vmax.f32 %v273_v0, %v277_v2  ;;  %v284_v5 = vmax.f32 %v274_v1, %v283_v3  ;;  %272 = vst.msk [vmem:[%s960_s18] sm:$0x3] %vm954_vm11, %v811_v33  ;;  %v361_v35 = vperm.slane %v360_v34, 0  ;;  %v362_v36 = vperm.slane %v360_v34, 1  ;;  %s407_s23 = sshll.u32 %s403_s19, 4  ;;  %s393_s15 = scalar_lea.sflag [#allocation4], %s932_s30  ;;  %s408_s23 = int_to_ptr.hbm [resolvable:$true] %s407_s23 }
  0x37   : > { %s731_s24 = sshra.s32 %s408_s23, 4  ;;  %s737_s29 = scalar_lea.hbm %s1012_s3, 4  ;;  %s732_s24 = int_to_ptr.hbm [resolvable:$true] %s731_s24 }
  0x38   : > { %v279_v6 = vrot.slane %v278_v4, 2  ;;  %v285_v7 = vrot.slane %v284_v5, 2  ;;  %vm363_vm12 = vcmp.eq.s32.totalorder %v276_v13, %v361_v35  ;;  %vm364_vm13 = vcmp.eq.s32.totalorder %v276_v13, %v362_v36  ;;  %s733_s26 = scalar_lea.hbm %s732_s24, 2  ;;  %p738_p11 = scmp.lt.s32.totalorder %s732_s24, %s1012_s3 }
  0x39   : > { %p734_p1 = scmp.ne.s32.totalorder %s732_s24, %s733_s26  ;;  %p739_p12 = scmp.lt.s32.totalorder %s737_s29, %s733_s26 }
  0x3a   : > { %v280_v9 = vmax.f32 %v278_v4, %v279_v6  ;;  %v286_v10 = vmax.f32 %v284_v5, %v285_v7 }
  0x3b   : > { %p735_p4 = pnand %p734_p1, %p907_p5  ;;  %p740_p13 = por %p739_p12, %p738_p11 }
  0x3c   : > { %v281_v11 = vrot.slane %v280_v9, 1  ;;  %v287_v12 = vrot.slane %v286_v10, 1 }
  0x3d   : > { %v379_v54 = vld [vmem:[%s960_s18] sm:$0x3]  ;;  %p736_p8 = pneg %p735_p4 }
  0x3e   : > { %v282_v14 = vmax.f32 %v280_v9, %v281_v11  ;;  %v288_v15 = vmax.f32 %v286_v10, %v287_v12 }
  0x3f   : > { %p741_p0 = pnand %p740_p13, %p736_p8 }
  0x40   : > { %vm289_vm0 = vcmp.ge.f32.partialorder %v273_v0, %v282_v14  ;;  %vm290_vm1 = vcmp.ge.f32.partialorder %v274_v1, %v288_v15 }
  0x41   : > { %v291_v16 = vsel %vm289_vm0, %v276_v13, 8  ;;  %v292_v17 = vsel %vm290_vm1, %v276_v13, 8 }
  0x42   : > { %v293_v18 = vrot.slane %v291_v16, 4  ;;  %v302_v19 = vrot.slane %v292_v17, 4 }
  0x44   : > { %vm294_vm2 = vcmp.lt.s32.totalorder %v291_v16, %v293_v18  ;;  %vm303_vm3 = vcmp.lt.s32.totalorder %v292_v17, %v302_v19 }
  0x45   : > { %v295_v20 = vsel %vm294_vm2, %v291_v16, %v293_v18  ;;  %v304_v21 = vsel %vm303_vm3, %v292_v17, %v302_v19 }
  0x46   : > { %v296_v22 = vrot.slane %v295_v20, 2  ;;  %v305_v23 = vrot.slane %v304_v21, 2 }
  0x48   : > { %vm297_vm4 = vcmp.lt.s32.totalorder %v295_v20, %v296_v22  ;;  %vm306_vm5 = vcmp.lt.s32.totalorder %v304_v21, %v305_v23 }
  0x49   : > { %v298_v24 = vsel %vm297_vm4, %v295_v20, %v296_v22  ;;  %v307_v25 = vsel %vm306_vm5, %v304_v21, %v305_v23 }
  0x4a   : > { %v299_v26 = vrot.slane %v298_v24, 1  ;;  %v308_v27 = vrot.slane %v307_v25, 1 }
  0x4c   : > { %vm300_vm6 = vcmp.lt.s32.totalorder %v298_v24, %v299_v26  ;;  %vm309_vm7 = vcmp.lt.s32.totalorder %v307_v25, %v308_v27 }
  0x4d   : > { %v301_v28 = vsel %vm300_vm6, %v298_v24, %v299_v26  ;;  %v310_v29 = vsel %vm309_vm7, %v307_v25, %v308_v27 }
  0x4e   : > { %vm311_vm9 = vcmp.eq.s32.totalorder %v276_v13, %v301_v28  ;;  %vm312_vm10 = vcmp.eq.s32.totalorder %v276_v13, %v310_v29 }
  0x4f   : > { %538 = vmatpush.msk.msra.mxu0 %vm311_vm9, %v810_v31  ;;  %540 = vmatpush.msk.msra.mxu1 %vm312_vm10, %v810_v31 }
  0x50   : > { %539 = vmatmul.msk.f32.vlgmr.msra.gmra.mxu0 %vm316_vm8, %v315_v30  ;;  %541 = vmatmul.msk.f32.vlgmr.msra.gmra.mxu1 %vm316_vm8, %v315_v30 }
  0xcd   : > { %v337_v37 = vpop.f32.mrf.mxu0  ;;  %v357_v38 = vpop.f32.mrf.mxu1 }
  0xce   : > { %v365_v39 = vsel %vm363_vm12, %v337_v37, 0.0  ;;  %v366_v40 = vsel %vm364_vm13, %v357_v38, 0.0 }
  0xcf   : > { %v367_v41 = vrot.slane %v365_v39, 4  ;;  %v373_v42 = vrot.slane %v366_v40, 4 }
  0xd1   : > { %v368_v43 = vadd.f32 %v367_v41, %v365_v39  ;;  %v374_v44 = vadd.f32 %v373_v42, %v366_v40 }
  0xd3   : > { %v369_v45 = vrot.slane %v368_v43, 2  ;;  %v375_v46 = vrot.slane %v374_v44, 2 }
  0xd5   : > { %v370_v47 = vadd.f32 %v369_v45, %v368_v43  ;;  %v376_v48 = vadd.f32 %v375_v46, %v374_v44 }
  0xd7   : > { %v371_v49 = vrot.slane %v370_v47, 1  ;;  %v377_v50 = vrot.slane %v376_v48, 1 }
  0xd9   : > { %v378_v51 = vadd.f32 %v377_v50, %v376_v48  ;;  %v372_v52 = vadd.f32 %v371_v49, %v370_v47 }
  0xdb   : > { %v382_v53 = vrot.slane %v378_v51, 7 }
  0xdd   : > { %v384_v55 = vsel %vm383_vm14, %v372_v52, %v382_v53 }
  0xde   : > { %v386_v56 = vadd.f32 %v384_v55, %v379_v54 }
  0xe0   : > { %391 = vst.msk [vmem:[%s960_s18] sm:$0x3] %vm954_vm11, %v386_v56 }
  0xe1   : > { %744 = shalt.err (!%p741_p0)
}
  0xe2   : > { %555 = dma.vmem_to_hbm [thread:$0]  (%p907_p5), %s406_s22, 32, %s408_s23, %s393_s15  }
  0xe3 PF: > { %s419_s6 = sand.u32 1, %s787_s12   ;;  %p569_p3 = pnand %p527_p9, %p877_p6 }
  0xe4   : > { %s420_s9 = scalar_lea.sflag [#allocation4], %s419_s6 }
  0xe5   : > { %p570_p7 = pneg %p569_p3 }
  0xe7   : > { %782 = dma.done.wait (%p570_p7), %s420_s9, 32  }
  0xe8   : > { %784 = vsyncadd (%p570_p7), %s420_s9, 4294967264  ;;  %s22_s17 = sadd.s32 1, %s807_s17   ;;  %s1030_s28 = sld [smem:[#allocation13_spill]] }
  0xe9   : > { %p19_p10 = scmp.ge.s32.totalorder %s22_s17, 4   ;;  %s1031_s14 = sld [smem:[#allocation16_spill]] }
  0xea   : > { %s1032_s4 = sld [smem:[#allocation15_spill]]  ;;  %s1033_s12 = smov %s791_s13 }
  0xeb   : > { %s1035_s15 = smov %s803_s16 }
  0xec   :  { %21 = sbr.rel (!%p19_p10) target bundleno = 10 (0xa), region = 98 }
  0xee   : > { %s1034_s13 = smov %s1030_s28 }
  0xf0   : > { %s1036_s16 = smov %s1032_s4 }
  0xf1   :  { %426 = vsyncpa [#allocation3], 1 }
  0xf2   :  { %428 = vsyncpa [#allocation3 + $0x1], 1 }
  0xf3   :  { %429 = vsyncpa [#allocation6], 1 }
  0xf4   :  { %431 = vsyncpa [#allocation6 + $0x1], 1 }
  0xf5   :  { %432 = vsyncpa [#allocation4], 1 }
  0xf6   :  { %434 = vsyncpa [#allocation4 + $0x1], 1 }

</bundles_post_ra>
